<compile_context>
chip_gen: v7x
topology: tpu7x:2x2x1
jax: 0.10.0
libtpu: 0.0.40
codegen_flags: <defaults>
</compile_context>

<pallas_src>
import functools

import jax
import jax.numpy as jnp
from jax.experimental import pallas as pl
from jax.experimental.pallas import tpu as pltpu

_VMEM_LIMIT = 32 * 1024 * 1024


def _round_up(x, m):
    return ((x + m - 1) // m) * m


# ----------------------------------------------------------------------------
# Conv matmul kernel: (Cout, K) @ (K, TM) + bias (+ SiLU), f32 accumulation
# ----------------------------------------------------------------------------

def _mm_kernel(p_ref, w_ref, b_ref, o_ref, *, act):
    acc = jnp.dot(w_ref[...], p_ref[0], preferred_element_type=jnp.float32)
    acc = acc + b_ref[...]
    if act:
        acc = acc * jax.nn.sigmoid(acc)  # SiLU
    o_ref[0] = acc.astype(o_ref.dtype)


def _pick_tm(K, M):
    # keep the double-buffered patch block around ~2 MiB -> fits every
    # generation's scoped-VMEM budget while amortizing per-step overhead
    if K <= 128:
        tm = 8192
    elif K <= 256:
        tm = 4096
    elif K <= 512:
        tm = 2048
    else:
        tm = 1024
    return min(tm, _round_up(M, 256))


def _matmul_bias_act(p, w, b, act, out_dtype):
    """p: (N, K, M) bf16, w: (Cout, K) bf16, b: (Cout, 1) f32 -> (N, Cout, M)."""
    N, K, M = p.shape
    Cout = w.shape[0]
    TM = _pick_tm(K, M)
    Mp = _round_up(M, TM)
    if Mp != M:
        p = jnp.pad(p, ((0, 0), (0, 0), (0, Mp - M)))
    grid = (N, Mp // TM)
    out = pl.pallas_call(
        functools.partial(_mm_kernel, act=act),
        grid=grid,
        in_specs=[
            pl.BlockSpec((1, K, TM), lambda n, m: (n, 0, m)),
            pl.BlockSpec((Cout, K), lambda n, m: (0, 0)),
            pl.BlockSpec((Cout, 1), lambda n, m: (0, 0)),
        ],
        out_specs=pl.BlockSpec((1, Cout, TM), lambda n, m: (n, 0, m)),
        out_shape=jax.ShapeDtypeStruct((N, Cout, Mp), out_dtype),
        compiler_params=pltpu.CompilerParams(
            dimension_semantics=("parallel", "parallel"),
            vmem_limit_bytes=_VMEM_LIMIT),
    )(p, w, b)
    return out[:, :, :M]


def conv2d(x, w, b, stride=1, padding=0, act=False, out_dtype=jnp.bfloat16):
    """Matches nn.Conv2d. x: (N,Cin,H,W), w: (Cout,Cin,KH,KW), b: (Cout,1)."""
    N, Cin, H, W = x.shape
    Cout, _, KH, KW = w.shape
    Ho = (H + 2 * padding - KH) // stride + 1
    Wo = (W + 2 * padding - KW) // stride + 1
    xp = x if padding == 0 else jnp.pad(
        x, ((0, 0), (0, 0), (padding, padding), (padding, padding)))
    cols = []
    for kh in range(KH):
        for kw in range(KW):
            cols.append(xp[:, :, kh:kh + stride * (Ho - 1) + 1:stride,
                           kw:kw + stride * (Wo - 1) + 1:stride])
    patches = jnp.stack(cols, axis=2)                       # (N, Cin, KH*KW, Ho, Wo)
    patches = patches.reshape(N, Cin * KH * KW, Ho * Wo).astype(jnp.bfloat16)
    out = _matmul_bias_act(patches, w.reshape(Cout, Cin * KH * KW), b, act, out_dtype)
    return out.reshape(N, Cout, Ho, Wo)


def conv_transpose2d_s2(x, w_fwd, b, act=False):
    """ConvTranspose2d(k=4, stride=2, padding=1) via sub-pixel decomposition:
    four 2x2 stride-1 convs over the UNdilated input + interleave.
    `w_fwd` (Cout,Cin,4,4) is stored directly as the equivalent forward-conv
    weight (synthetic init)."""
    # TODO(synk): loading real PyTorch ConvTranspose2d weights would require the
    # spatial flip + in/out transpose before this decomposition.
    N, Cin, H, W = x.shape
    Cout = w_fwd.shape[0]
    rows = []
    for ph in (0, 1):
        cols = []
        for pw in (0, 1):
            w_sub = w_fwd[:, :, ph::2, pw::2]               # (Cout, Cin, 2, 2)
            xpad = jnp.pad(x, ((0, 0), (0, 0), (1 - ph, ph), (1 - pw, pw)))
            cols.append(conv2d(xpad, w_sub, b, stride=1, padding=0, act=act))
        rows.append(jnp.stack(cols, axis=-1))               # (N,Cout,H,W,2)
    out = jnp.stack(rows, axis=-3)                          # (N,Cout,H,2,W,2)
    return out.reshape(N, Cout, 2 * H, 2 * W)


def conv_transpose2d_s1(x, w_fwd, b, act=False):
    """ConvTranspose2d(k, stride=1, padding=0) as a stride-1 conv, padding k-1."""
    K = w_fwd.shape[2]
    return conv2d(x, w_fwd, b, stride=1, padding=K - 1, act=act)


# ----------------------------------------------------------------------------
# LayerNorm((C,H,W)) with fused time-embedding broadcast add
# ----------------------------------------------------------------------------

def _ln_stats_kernel(x_ref, te_ref, sum_ref, sq_ref):
    @pl.when(pl.program_id(1) == 0)
    def _():
        sum_ref[...] = jnp.zeros_like(sum_ref)
        sq_ref[...] = jnp.zeros_like(sq_ref)

    xf = x_ref[0].astype(jnp.float32) + te_ref[0]           # (C,TH,W) + (C,1,W)
    sum_ref[...] += jnp.full(sum_ref.shape, jnp.sum(xf), dtype=jnp.float32)
    sq_ref[...] += jnp.full(sq_ref.shape, jnp.sum(xf * xf), dtype=jnp.float32)


def _ln_apply_kernel(x_ref, te_ref, g_ref, b_ref, mean_ref, rstd_ref, o_ref):
    n = pl.program_id(0)
    xf = x_ref[0].astype(jnp.float32) + te_ref[0]
    y = (xf - mean_ref[n]) * rstd_ref[n]
    o_ref[0] = (y * g_ref[0].astype(jnp.float32)
                + b_ref[0].astype(jnp.float32)).astype(o_ref.dtype)


def layernorm(x, gamma, beta, te_vec=None, eps=1e-5):
    """nn.LayerNorm((C,H,W)) on NCHW input; te_vec (N,Cte) is broadcast-added to
    x before normalization (fused, no HBM round-trip of x+te)."""
    N, C, H, W = x.shape
    if te_vec is None:
        te_b = jnp.zeros((N, C, 1, W), jnp.float32)
    else:
        te_b = jnp.broadcast_to(
            te_vec.astype(jnp.float32)[:, :, None, None], (N, C, 1, W))
    TH = H if H <= 64 else 64
    nT = H // TH

    sums, sqs = pl.pallas_call(
        _ln_stats_kernel,
        grid=(N, nT),
        in_specs=[
            pl.BlockSpec((1, C, TH, W), lambda n, t: (n, 0, t, 0)),
            pl.BlockSpec((1, C, 1, W), lambda n, t: (n, 0, 0, 0)),
        ],
        out_specs=[
            pl.BlockSpec((1, 1, 128), lambda n, t: (n, 0, 0)),
            pl.BlockSpec((1, 1, 128), lambda n, t: (n, 0, 0)),
        ],
        out_shape=[jax.ShapeDtypeStruct((N, 1, 128), jnp.float32),
                   jax.ShapeDtypeStruct((N, 1, 128), jnp.float32)],
        compiler_params=pltpu.CompilerParams(
            dimension_semantics=("parallel", "arbitrary"),
            vmem_limit_bytes=_VMEM_LIMIT),
    )(x, te_b)

    cnt = float(C * H * W)
    mean = sums[:, 0, 0] / cnt
    var = jnp.maximum(sqs[:, 0, 0] / cnt - mean * mean, 0.0)
    rstd = jax.lax.rsqrt(var + eps)

    out = pl.pallas_call(
        _ln_apply_kernel,
        grid=(N, nT),
        in_specs=[
            pl.BlockSpec((1, C, TH, W), lambda n, t: (n, 0, t, 0)),
            pl.BlockSpec((1, C, 1, W), lambda n, t: (n, 0, 0, 0)),
            pl.BlockSpec((1, C, TH, W), lambda n, t: (0, 0, t, 0)),
            pl.BlockSpec((1, C, TH, W), lambda n, t: (0, 0, t, 0)),
            pl.BlockSpec(memory_space=pltpu.MemorySpace.SMEM),
            pl.BlockSpec(memory_space=pltpu.MemorySpace.SMEM),
        ],
        out_specs=pl.BlockSpec((1, C, TH, W), lambda n, t: (n, 0, t, 0)),
        out_shape=jax.ShapeDtypeStruct((N, C, H, W), jnp.bfloat16),
        compiler_params=pltpu.CompilerParams(
            dimension_semantics=("parallel", "parallel"),
            vmem_limit_bytes=_VMEM_LIMIT),
    )(x, te_b, gamma, beta, mean, rstd)
    return out


# ----------------------------------------------------------------------------
# All 7 time-embedding MLPs (Linear->SiLU->Linear) in one batched Pallas call
# ----------------------------------------------------------------------------

def _te_stack_kernel(t_ref, w1_ref, b1_ref, w2_ref, b2_ref, o_ref):
    h = jnp.dot(t_ref[...], w1_ref[0], preferred_element_type=jnp.float32) + b1_ref[0]
    h = h * jax.nn.sigmoid(h)  # SiLU
    o_ref[0] = jnp.dot(h, w2_ref[0], preferred_element_type=jnp.float32) + b2_ref[0]


def te_mlp_all(temb, p):
    N, D = temb.shape
    G = p["w1"].shape[0]
    return pl.pallas_call(
        _te_stack_kernel,
        grid=(G,),
        in_specs=[
            pl.BlockSpec((N, D), lambda i: (0, 0)),
            pl.BlockSpec((1, D, 128), lambda i: (i, 0, 0)),
            pl.BlockSpec((1, 1, 128), lambda i: (i, 0, 0)),
            pl.BlockSpec((1, 128, 128), lambda i: (i, 0, 0)),
            pl.BlockSpec((1, 1, 128), lambda i: (i, 0, 0)),
        ],
        out_specs=pl.BlockSpec((1, N, 128), lambda i: (i, 0, 0)),
        out_shape=jax.ShapeDtypeStruct((G, N, 128), jnp.float32),
        compiler_params=pltpu.CompilerParams(
            dimension_semantics=("parallel",)),
    )(temb, p["w1"], p["b1"], p["w2"], p["b2"])


# ----------------------------------------------------------------------------
# Parameters (deterministic synthetic init)
# ----------------------------------------------------------------------------

class _KeyGen:
    def __init__(self, seed):
        self._key = jax.random.PRNGKey(seed)

    def __call__(self):
        self._key, k = jax.random.split(self._key)
        return k


def _init_conv(kg, cout, cin, kh, kw):
    bound = 1.0 / (cin * kh * kw) ** 0.5
    w = jax.random.uniform(kg(), (cout, cin, kh, kw), jnp.float32, -bound, bound)
    b = jax.random.uniform(kg(), (cout, 1), jnp.float32, -bound, bound)
    return {"w": w.astype(jnp.bfloat16), "b": b}


def _init_block(kg, shape_chw, cin, cout):
    C, H, W = shape_chw
    assert C == cin
    return {
        "ln_g": jnp.ones((1, C, H, W), jnp.bfloat16),   # nn.LayerNorm default affine
        "ln_b": jnp.zeros((1, C, H, W), jnp.bfloat16),
        "conv1": _init_conv(kg, cout, cin, 3, 3),
        "conv2": _init_conv(kg, cout, cout, 3, 3),
    }


def _init_te_stack(kg, dim_in, ds):
    w1s, b1s, w2s, b2s = [], [], [], []
    for d in ds:
        bd1 = 1.0 / dim_in ** 0.5
        w1 = jax.random.uniform(kg(), (dim_in, d), jnp.float32, -bd1, bd1)
        b1 = jax.random.uniform(kg(), (d,), jnp.float32, -bd1, bd1)
        bd2 = 1.0 / d ** 0.5
        w2 = jax.random.uniform(kg(), (d, d), jnp.float32, -bd2, bd2)
        b2 = jax.random.uniform(kg(), (d,), jnp.float32, -bd2, bd2)
        w1s.append(jnp.zeros((dim_in, 128), jnp.float32).at[:, :d].set(w1))
        b1s.append(jnp.zeros((1, 128), jnp.float32).at[:, :d].set(b1))
        w2s.append(jnp.zeros((128, 128), jnp.float32).at[:d, :d].set(w2))
        b2s.append(jnp.zeros((1, 128), jnp.float32).at[:, :d].set(b2))
    return {"w1": jnp.stack(w1s), "b1": jnp.stack(b1s),
            "w2": jnp.stack(w2s), "b2": jnp.stack(b2s), "ds": list(ds)}


def sinusoidal_embedding(n, d):
    j = jnp.arange(d, dtype=jnp.float32)
    wk = 1.0 / (10000.0 ** (2.0 * j / d))
    t = jnp.arange(n, dtype=jnp.float32)[:, None]
    emb = jnp.zeros((n, d), jnp.float32)
    emb = emb.at[:, 0::2].set(jnp.sin(t * wk[0::2][None, :]))
    emb = emb.at[:, 1::2].set(jnp.cos(t * wk[0::2][None, :]))
    return emb


def init_unet_params(seed=0, n_steps=1000, time_emb_dim=100):
    kg = _KeyGen(seed)
    P = {}
    P["time_embed"] = sinusoidal_embedding(n_steps, time_emb_dim)
    # order: te1, te2, te3, te_mid, te4, te5, te_out
    P["te"] = _init_te_stack(kg, time_emb_dim, [1, 10, 20, 40, 80, 40, 20])
    P["b1"] = [_init_block(kg, (3, 256, 256), 3, 10),
               _init_block(kg, (10, 256, 256), 10, 10),
               _init_block(kg, (10, 256, 256), 10, 10)]
    P["down1"] = _init_conv(kg, 10, 10, 4, 4)
    P["b2"] = [_init_block(kg, (10, 128, 128), 10, 20),
               _init_block(kg, (20, 128, 128), 20, 20),
               _init_block(kg, (20, 128, 128), 20, 20)]
    P["down2"] = _init_conv(kg, 20, 20, 4, 4)
    P["b3"] = [_init_block(kg, (20, 64, 64), 20, 40),
               _init_block(kg, (40, 64, 64), 40, 40),
               _init_block(kg, (40, 64, 64), 40, 40)]
    P["down3a"] = _init_conv(kg, 40, 40, 2, 2)
    P["down3b"] = _init_conv(kg, 40, 40, 4, 4)
    P["b_mid"] = [_init_block(kg, (40, 31, 31), 40, 20),
                  _init_block(kg, (20, 31, 31), 20, 20),
                  _init_block(kg, (20, 31, 31), 20, 40)]
    P["up1a"] = _init_conv(kg, 40, 40, 4, 4)   # ConvTranspose2d(40,40,4,2,1) fwd-equiv
    P["up1b"] = _init_conv(kg, 40, 40, 2, 2)   # ConvTranspose2d(40,40,2,1)   fwd-equiv
    P["b4"] = [_init_block(kg, (80, 64, 64), 80, 40),
               _init_block(kg, (40, 64, 64), 40, 20),
               _init_block(kg, (20, 64, 64), 20, 20)]
    P["up2"] = _init_conv(kg, 20, 20, 4, 4)    # ConvTranspose2d(20,20,4,2,1) fwd-equiv
    P["b5"] = [_init_block(kg, (40, 128, 128), 40, 20),
               _init_block(kg, (20, 128, 128), 20, 10),
               _init_block(kg, (10, 128, 128), 10, 10)]
    P["up3"] = _init_conv(kg, 10, 10, 4, 4)    # ConvTranspose2d(10,10,4,2,1) fwd-equiv
    P["b_out"] = [_init_block(kg, (20, 256, 256), 20, 10),
                  _init_block(kg, (10, 256, 256), 10, 10),
                  _init_block(kg, (10, 256, 256), 10, 10)]
    P["conv_out"] = _init_conv(kg, 3, 10, 3, 3)
    return P


# ----------------------------------------------------------------------------
# Forward pass (mirrors MyUNet.forward)
# ----------------------------------------------------------------------------

def _block_forward(p, x, te_vec=None, normalize=True):
    h = layernorm(x, p["ln_g"], p["ln_b"], te_vec) if normalize else x
    h = conv2d(h, p["conv1"]["w"], p["conv1"]["b"], stride=1, padding=1, act=True)
    h = conv2d(h, p["conv2"]["w"], p["conv2"]["b"], stride=1, padding=1, act=True)
    return h


def _block_seq(ps, x, te_vec, last_norm=True):
    x = _block_forward(ps[0], x, te_vec=te_vec)
    x = _block_forward(ps[1], x)
    x = _block_forward(ps[2], x, normalize=last_norm)
    return x


def unet_forward(P, x_nchw, t):
    x = x_nchw.astype(jnp.bfloat16)                           # NCHW, bf16 activations
    temb = P["time_embed"][t]                                 # (N, 100)
    te_all = te_mlp_all(temb, P["te"])                        # (7, N, 128)
    te1, te2, te3, te_mid, te4, te5, te_out = [
        te_all[i, :, :d] for i, d in enumerate(P["te"]["ds"])]

    out1 = _block_seq(P["b1"], x, te1)                                             # (N,10,256,256)
    out2 = _block_seq(P["b2"],
                      conv2d(out1, P["down1"]["w"], P["down1"]["b"], 2, 1), te2)   # (N,20,128,128)
    out3 = _block_seq(P["b3"],
                      conv2d(out2, P["down2"]["w"], P["down2"]["b"], 2, 1), te3)   # (N,40,64,64)

    h = conv2d(out3, P["down3a"]["w"], P["down3a"]["b"], 1, 0, act=True)           # (N,40,63,63)
    h = conv2d(h, P["down3b"]["w"], P["down3b"]["b"], 2, 1)                        # (N,40,31,31)
    out_mid = _block_seq(P["b_mid"], h, te_mid)                                    # (N,40,31,31)

    h = conv_transpose2d_s2(out_mid, P["up1a"]["w"], P["up1a"]["b"], act=True)     # (N,40,62,62)
    h = conv_transpose2d_s1(h, P["up1b"]["w"], P["up1b"]["b"])                     # (N,40,63,63)
    idx = (jnp.arange(64) * h.shape[2]) // 64                                      # nearest resize
    sploot1 = h[:, :, idx, :][:, :, :, idx]                                        # (N,40,64,64)

    out4 = _block_seq(P["b4"], jnp.concatenate([out3, sploot1], axis=1), te4)      # (N,20,64,64)
    h = conv_transpose2d_s2(out4, P["up2"]["w"], P["up2"]["b"])                    # (N,20,128,128)
    out5 = _block_seq(P["b5"], jnp.concatenate([out2, h], axis=1), te5)            # (N,10,128,128)
    h = conv_transpose2d_s2(out5, P["up3"]["w"], P["up3"]["b"])                    # (N,10,256,256)
    out = _block_seq(P["b_out"], jnp.concatenate([out1, h], axis=1), te_out,
                     last_norm=False)                                              # (N,10,256,256)
    out = conv2d(out, P["conv_out"]["w"], P["conv_out"]["b"], 1, 1,
                 out_dtype=jnp.float32)                                            # (N,3,256,256)
    return out


# ----------------------------------------------------------------------------

if __name__ == "__main__":
    params = init_unet_params(seed=0)
    key = jax.random.PRNGKey(0)
    kx, kt = jax.random.split(key)
    # Spatial size 256 is hard-wired by the module's LayerNorm shapes.
    x = jax.random.normal(kx, (2, 3, 256, 256), jnp.float32)
    t = jax.random.randint(kt, (2,), 0, 1000)

    out = unet_forward(params, x, t)
    out = jax.block_until_ready(out)
    assert out.shape == (2, 3, 256, 256) and out.dtype == jnp.float32
    assert bool(jnp.all(jnp.isfinite(out)))
    print("KERNEL_OK")
</pallas_src>

<mosaic_0001>
module attributes {stable_mosaic.version = 11 : i64} {
  func.func @_te_stack_kernel(%arg0: i32, %arg1: memref<2x100xf32, #tpu.memory_space<vmem>>, %arg2: memref<1x100x128xf32, #tpu.memory_space<vmem>>, %arg3: memref<1x1x128xf32, #tpu.memory_space<vmem>>, %arg4: memref<1x128x128xf32, #tpu.memory_space<vmem>>, %arg5: memref<1x1x128xf32, #tpu.memory_space<vmem>>, %arg6: memref<1x2x128xf32, #tpu.memory_space<vmem>>) attributes {dimension_semantics = [#tpu.dimension_semantics<parallel>], iteration_bounds = array<i64: 7>, scalar_prefetch = 0 : i64, scratch_operands = 0 : i64, tpu.core_type = #tpu.core_type<tc>, window_params = [{pipeline_mode = #tpu.pipeline_mode<synchronous>, transform_indices = @transform_0, window_bounds = array<i64: 2, 100>}, {transform_indices = @transform_1, window_bounds = array<i64: 1, 100, 128>}, {transform_indices = @transform_2, window_bounds = array<i64: 1, 1, 128>}, {transform_indices = @transform_3, window_bounds = array<i64: 1, 128, 128>}, {transform_indices = @transform_4, window_bounds = array<i64: 1, 1, 128>}, {transform_indices = @transform_5, window_bounds = array<i64: 1, 2, 128>}]} {
    %c0 = arith.constant 0 : index
    %c0_0 = arith.constant 0 : index
    %0 = vector.load %arg1[%c0, %c0_0] : memref<2x100xf32, #tpu.memory_space<vmem>>, vector<2x100xf32>
    %c0_1 = arith.constant 0 : index
    %c0_2 = arith.constant 0 : index
    %c0_3 = arith.constant 0 : index
    %1 = vector.load %arg2[%c0_1, %c0_2, %c0_3] : memref<1x100x128xf32, #tpu.memory_space<vmem>>, vector<1x100x128xf32>
    %2 = vector.shape_cast %1 : vector<1x100x128xf32> to vector<100x128xf32>
    %cst = arith.constant dense<0.000000e+00> : vector<2x128xf32>
    %3 = tpu.matmul %0, %2, %cst {dimension_numbers = #tpu.dot_dimension_numbers<[1], [0], [0], [1], [0, 0, 1, 1], [], []>} : vector<2x100xf32>, vector<100x128xf32>, vector<2x128xf32> -> vector<2x128xf32>
    %c0_4 = arith.constant 0 : index
    %c0_5 = arith.constant 0 : index
    %c0_6 = arith.constant 0 : index
    %4 = vector.load %arg3[%c0_4, %c0_5, %c0_6] : memref<1x1x128xf32, #tpu.memory_space<vmem>>, vector<1x1x128xf32>
    %5 = vector.shape_cast %4 : vector<1x1x128xf32> to vector<1x128xf32>
    %6 = vector.broadcast %5 : vector<1x128xf32> to vector<2x128xf32>
    %7 = arith.addf %3, %6 : vector<2x128xf32>
    %8 = arith.negf %7 : vector<2x128xf32>
    %9 = math.exp %8 : vector<2x128xf32>
    %cst_7 = arith.constant 1.000000e+00 : f32
    %10 = vector.broadcast %cst_7 : f32 to vector<2x128xf32>
    %11 = arith.addf %10, %9 : vector<2x128xf32>
    %12 = arith.divf %10, %11 : vector<2x128xf32>
    %13 = arith.mulf %7, %12 : vector<2x128xf32>
    %c0_8 = arith.constant 0 : index
    %c0_9 = arith.constant 0 : index
    %c0_10 = arith.constant 0 : index
    %14 = vector.load %arg4[%c0_8, %c0_9, %c0_10] : memref<1x128x128xf32, #tpu.memory_space<vmem>>, vector<1x128x128xf32>
    %15 = vector.shape_cast %14 : vector<1x128x128xf32> to vector<128x128xf32>
    %cst_11 = arith.constant dense<0.000000e+00> : vector<2x128xf32>
    %16 = tpu.matmul %13, %15, %cst_11 {dimension_numbers = #tpu.dot_dimension_numbers<[1], [0], [0], [1], [0, 0, 1, 1], [], []>} : vector<2x128xf32>, vector<128x128xf32>, vector<2x128xf32> -> vector<2x128xf32>
    %c0_12 = arith.constant 0 : index
    %c0_13 = arith.constant 0 : index
    %c0_14 = arith.constant 0 : index
    %17 = vector.load %arg5[%c0_12, %c0_13, %c0_14] : memref<1x1x128xf32, #tpu.memory_space<vmem>>, vector<1x1x128xf32>
    %18 = vector.shape_cast %17 : vector<1x1x128xf32> to vector<1x128xf32>
    %19 = vector.broadcast %18 : vector<1x128xf32> to vector<2x128xf32>
    %20 = arith.addf %16, %19 : vector<2x128xf32>
    %c0_15 = arith.constant 0 : index
    %c0_16 = arith.constant 0 : index
    %c0_17 = arith.constant 0 : index
    %21 = vector.load %arg6[%c0_15, %c0_16, %c0_17] : memref<1x2x128xf32, #tpu.memory_space<vmem>>, vector<1x2x128xf32>
    %22 = vector.shape_cast %21 : vector<1x2x128xf32> to vector<2x128xf32>
    %23 = vector.shape_cast %20 : vector<2x128xf32> to vector<1x2x128xf32>
    tpu.vector_store %arg6[%c0_15, %c0_16, %c0_17], %23 {strides = array<i32>} : memref<1x2x128xf32, #tpu.memory_space<vmem>>, vector<1x2x128xf32>,
    return
  }
  func.func @transform_0(%arg0: i32) -> (i32, i32) {
    %c0_i32 = arith.constant 0 : i32
    %c0_i32_0 = arith.constant 0 : i32
    %c0_i32_1 = arith.constant 0 : i32
    return %c0_i32, %c0_i32_0 : i32, i32
  }
  func.func @transform_1(%arg0: i32) -> (i32, i32, i32) {
    %c0_i32 = arith.constant 0 : i32
    %c0_i32_0 = arith.constant 0 : i32
    %c0_i32_1 = arith.constant 0 : i32
    return %arg0, %c0_i32, %c0_i32_0 : i32, i32, i32
  }
  func.func @transform_2(%arg0: i32) -> (i32, i32, i32) {
    %c0_i32 = arith.constant 0 : i32
    %c0_i32_0 = arith.constant 0 : i32
    %c0_i32_1 = arith.constant 0 : i32
    return %arg0, %c0_i32, %c0_i32_0 : i32, i32, i32
  }
  func.func @transform_3(%arg0: i32) -> (i32, i32, i32) {
    %c0_i32 = arith.constant 0 : i32
    %c0_i32_0 = arith.constant 0 : i32
    %c0_i32_1 = arith.constant 0 : i32
    return %arg0, %c0_i32, %c0_i32_0 : i32, i32, i32
  }
  func.func @transform_4(%arg0: i32) -> (i32, i32, i32) {
    %c0_i32 = arith.constant 0 : i32
    %c0_i32_0 = arith.constant 0 : i32
    %c0_i32_1 = arith.constant 0 : i32
    return %arg0, %c0_i32, %c0_i32_0 : i32, i32, i32
  }
  func.func @transform_5(%arg0: i32) -> (i32, i32, i32) {
    %c0_i32 = arith.constant 0 : i32
    %c0_i32_0 = arith.constant 0 : i32
    %c0_i32_1 = arith.constant 0 : i32
    return %arg0, %c0_i32, %c0_i32_0 : i32, i32, i32
  }
}

</mosaic_0001>

<bundles_post_ra>
// kernel: tpu_custom_call.1
= control target key start
LH: loop header
LB: loop body
LE: loop exit
PB: predicated region body
PF: predicated region fallthrough
CT: control target
= control target key end

     0   :  { %s1388_s0 = inlined_call_operand.hbm [shape: f32[2,100], index: 0, kind: input, shape index: {}]   ;;  %s1389_s1 = inlined_call_operand.hbm [shape: f32[7,100,128], index: 1, kind: input, shape index: {}]   ;;  %s1390_s2 = inlined_call_operand.vmem [shape: f32[7,1,128], index: 2, kind: input, shape index: {}]   ;;  %s1391_s3 = inlined_call_operand.hbm [shape: f32[7,128,128], index: 3, kind: input, shape index: {}]   ;;  %s1392_s4 = inlined_call_operand.vmem [shape: f32[7,1,128], index: 4, kind: input, shape index: {}]   ;;  %s1393_s5 = inlined_call_operand.hbm [shape: f32[7,2,128], index: 5, kind: output, shape index: {}]  }
   0x1   :  { %1399 = sst [smem:[#allocation12_spill]] %s1389_s1 }
   0x2   :  { %10 = vsyncpa [#allocation3], 0 }
   0x3   :  { %11 = vsyncpa [#allocation6], 0 }
   0x4   :  { %13 = vsyncpa [#allocation6 + $0x1], 0 }
   0x5   :  { %14 = vsyncpa [#allocation4], 0 }
   0x6   :  { %16 = vsyncpa [#allocation4 + $0x1], 0  ;;  %s1087_s18 = smov 0   ;;  %s1089_s19 = smov 0  }
   0x7   :  { %s1091_s20 = smov 0   ;;  %s1093_s21 = smov 0  }
   0x8 LB: > { %s1108_s22 = sadd.s32 1, %s1046_s21   ;;  %s50_s23 = sadd.s32 1, %s1042_s20  ;;  %s1046_s21 = sphi %s1093_s21, %s1417_s21   ;;  %s1042_s20 = sphi %s1091_s20, %s1416_s20   ;;  %s1038_s19 = sphi %s1089_s19, %s1415_s19   ;;  %s1034_s18 = sphi %s1087_s18, %s1414_s18  }
   0x9   : > { %s47_s24 = ssub.s32 %s1046_s21, %s1108_s22  ;;  %p57_p0 = scmp.ne.s32.totalorder %s1042_s20, %s1038_s19 }
   0xa   : > { %p48_p1 = scmp.eq.s32.totalorder %s47_s24, 0  ;;  %p58_p2 = scmp.eq.s32.totalorder %s1046_s21, 0 }
   0xb   : > { %p843_p3 = scmp.lt.s32.totalorder %s1046_s21, 7  ;;  %s202_s26 = sand.u32 1, %s1046_s21  }
   0xc   : > { %s1118_s25 = scalar_select %p48_p1, %s1042_s20, %s50_s23  }
   0xd   : > { %p59_p4 = por %p58_p2, %p57_p0  ;;  %s204_s27 = sand.u32 1, %s1042_s20  }
   0xe   : > { %s814_s28 = smul.u32 104, %s204_s27  ;;  %s1401_s1 = sld [smem:[#allocation12_spill]] }
   0xf   : > { %p1127_p5 = pnand %p843_p3, %p59_p4  ;;  %s815_s30 = smul.u32 1664, %s1046_s21 }
  0x10   : > { %s206_s9 = scalar_lea.vmem [#allocation5], %s814_s28  ;;  %s1139_s11 = scalar_lea.sflag [#allocation6], %s202_s26 }
  0x11   : > { %s213_s10 = sshll.u32 %s206_s9, 4  ;;  %p890_p7 = pneg %p1127_p5  ;;  %s1137_s10 = int_to_ptr.vmem [resolvable:$true] %s213_s10 }
  0x14   : > { %s1135_s8 = scalar_lea.hbm %s1401_s1, %s815_s30  ;;  %s893_s15 = scalar_lea.hbm %s1401_s1, 11648 }
  0x15   : > { %s888_s12 = scalar_lea.hbm %s1135_s8, 1664  ;;  %p894_p10 = scmp.lt.u32.totalorder %s1135_s8, %s1401_s1 }
  0x16   : > { %p889_p6 = scmp.ne.s32.totalorder %s1135_s8, %s888_s12  ;;  %p895_p11 = scmp.lt.u32.totalorder %s893_s15, %s888_s12 }
  0x17   : > { %p897_p13 = scmp.lt.u32.totalorder %s888_s12, %s1135_s8 }
  0x18   : > { %p891_p8 = pnand %p890_p7, %p889_p6  ;;  %p896_p12 = por %p895_p11, %p894_p10 }
  0x1a   : > { %p892_p9 = pneg %p891_p8  ;;  %p898_p1 = por %p897_p13, %p896_p12 }
  0x1c   : > { %p899_p2 = pnand %p898_p1, %p892_p9 }
  0x1e   : > { %902 = shalt.err (!%p899_p2)
}
  0x1f   : > { %s903_s23 = scalar_lea.vmem %s1137_s10, 1664  ;;  %s1048_s24 = smov [#allocation5]  }
  0x20   : > { %p904_p3 = scmp.ne.s32.totalorder %s1137_s10, %s903_s23  ;;  %s908_s26 = sshll.u32 %s1048_s24, 4  ;;  %s909_s26 = int_to_ptr.vmem [resolvable:$false] %s908_s26 }
  0x21   : > { %s910_s28 = scalar_lea.vmem %s909_s26, 3328  ;;  %p911_p8 = scmp.lt.s32.totalorder %s1137_s10, %s909_s26 }
  0x22   : > { %p906_p4 = pnand %p904_p3, %p890_p7  ;;  %p912_p10 = scmp.lt.s32.totalorder %s910_s28, %s903_s23 }
  0x24   : > { %p907_p6 = pneg %p906_p4  ;;  %p913_p11 = por %p912_p10, %p911_p8 }
  0x26   : > { %p914_p12 = pnand %p913_p11, %p907_p6 }
  0x28   : > { %917 = shalt.err (!%p914_p12)
}
  0x29   : > { %s1396_s30 = smov 128   ;;  %s1050_s6 = smov 8  }
  0x2a   : > { %834 = dma.hbm_to_vmem [thread:$0]  (!%p1127_p5), %s1135_s8, 1664, %s1137_s10, %s1139_s11, %s1396_s30, %s1396_s30, %s1050_s6  }
  0x2b   : > { %s660_s7 = sshll.u32 %s204_s27, 7  ;;  %s1173_s9 = sadd.s32 4294967295, %s1046_s21  }
  0x2c   : > { %s655_s12 = sadd.s32 4294967294, %s1046_s21   ;;  %p63_p9 = scmp.ne.s32.totalorder %s1038_s19, %s1034_s18 }
  0x2d   : > { %p1394_p13 = scmp.eq.s32.totalorder %s1173_s9, 0  ;;  %p165_p1 = scmp.eq.s32.totalorder %s1173_s9, 6 }
  0x2e   : > { %p171_p2 = scmp.eq.s32.totalorder %s655_s12, 6  ;;  %p656_p4 = scmp.ge.s32.totalorder %s1046_s21, 1 }
  0x2f   : > { %p1182_p3 = por %p1394_p13, %p63_p9  ;;  %p1190_p6 = por %p165_p1, %p57_p0 }
  0x30   : > { %p1194_p8 = por %p171_p2, %p63_p9  ;;  %p178_p10 = scmp.lt.s32.totalorder %s1046_s21, 8 }
  0x31   : > { %s1402_s13 = scalar_select %p1182_p3, 1, 0 }
  0x32   : > { %s1403_s27 = scalar_select %p1190_p6, 1, 0 }
  0x33   : > { %s1404_s8 = scalar_select %p1194_p8, 1, 0 }
  0x34   : > { %s676_s10 = sshll.u32 %s1046_s21, 11  ;;  %p1200_p11 = pnand %p656_p4, %p178_p10 }
  0x35   : > { %s1051_s15 = smov [#allocation2]   ;;  %s1207_s24 = scalar_lea.hbm %s1391_s3, %s676_s10 }
  0x36   : > { %s1405_s14 = scalar_select %p1200_p11, 1, 0 }
  0x37   : > { %s191_s16 = sshll.u32 %s1051_s15, 4  ;;  %p827_p0 = pneg %p1200_p11  ;;  %s1213_s16 = int_to_ptr.vmem [resolvable:$true] %s191_s16 }
  0x38   : > { %s233_s26 = scalar_lea.vmem [#allocation7], %s660_s7  ;;  %s918_s15 = scalar_lea.hbm %s1207_s24, 2048 }
  0x39   : > { %s240_s28 = sshll.u32 %s233_s26, 4  ;;  %p1217_p12 = pnand %p827_p0, %p1394_p13  ;;  %s1211_s28 = int_to_ptr.vmem [resolvable:$true] %s240_s28 }
  0x3a   : > { %p919_p9 = scmp.ne.s32.totalorder %s1207_s24, %s918_s15  ;;  %s923_s7 = scalar_lea.hbm %s1391_s3, 14336 }
  0x3b   : > { %p924_p4 = scmp.lt.u32.totalorder %s1207_s24, %s1391_s3  ;;  %p925_p10 = scmp.lt.u32.totalorder %s923_s7, %s918_s15 }
  0x3c   : > { %p921_p1 = pnand %p919_p9, %p890_p7  ;;  %p927_p0 = scmp.lt.u32.totalorder %s918_s15, %s1207_s24 }
  0x3d   : > { %p926_p8 = por %p925_p10, %p924_p4 }
  0x3e   : > { %p922_p2 = pneg %p921_p1 }
  0x3f   : > { %p928_p13 = por %p927_p0, %p926_p8 }
  0x41   : > { %p929_p6 = pnand %p928_p13, %p922_p2 }
  0x43   : > { %932 = shalt.err (!%p929_p6)
}
  0x44   : > { %s933_s30 = scalar_lea.vmem %s1211_s28, 2048  ;;  %s1052_s10 = smov [#allocation7]  }
  0x45   : > { %p934_p9 = scmp.ne.s32.totalorder %s1211_s28, %s933_s30  ;;  %s938_s17 = sshll.u32 %s1052_s10, 4  ;;  %s939_s17 = int_to_ptr.vmem [resolvable:$false] %s938_s17 }
  0x46   : > { %s940_s23 = scalar_lea.vmem %s939_s17, 4096  ;;  %p941_p11 = scmp.lt.s32.totalorder %s1211_s28, %s939_s17 }
  0x47   : > { %p936_p1 = pnand %p934_p9, %p890_p7  ;;  %p942_p4 = scmp.lt.s32.totalorder %s940_s23, %s933_s30 }
  0x49   : > { %p937_p3 = pneg %p936_p1  ;;  %p943_p10 = por %p942_p4, %p941_p11 }
  0x4b   : > { %p944_p8 = pnand %p943_p10, %p937_p3 }
  0x4d   : > { %947 = shalt.err (!%p944_p8)
}
  0x4e   : > { %s1407_s15 = smov 128   ;;  %s948_s10 = scalar_lea.hbm %s1388_s0, 32 }
  0x4f   : > { %837 = dma.hbm_to_vmem [thread:$0]  (!%p1127_p5), %s1207_s24, 2048, %s1211_s28, %s1139_s11, %s1407_s15, %s1407_s15, %s1050_s6  }
  0x50   : > { %p949_p7 = scmp.ne.s32.totalorder %s1388_s0, %s948_s10  ;;  %p950_p13 = pneg %p1217_p12 }
  0x51   : > { %p955_p11 = scmp.lt.u32.totalorder %s948_s10, %s1388_s0 }
  0x52   : > { %p951_p3 = pnand %p950_p13, %p949_p7 }
  0x54   : > { %p952_p6 = pneg %p951_p3 }
  0x56   : > { %p957_p2 = pnand %p955_p11, %p952_p6 }
  0x58   : > { %960 = shalt.err (!%p957_p2)
}
  0x59   : > { %s961_s11 = scalar_lea.vmem %s1213_s16, 32  ;;  %p969_p1 = scmp.lt.s32.totalorder %s1213_s16, %s1213_s16 }
  0x5a   : > { %p962_p5 = scmp.ne.s32.totalorder %s1213_s16, %s961_s11  ;;  %p970_p4 = scmp.lt.s32.totalorder %s961_s11, %s961_s11 }
  0x5c   : > { %p964_p0 = pnand %p962_p5, %p950_p13  ;;  %p971_p10 = por %p970_p4, %p969_p1 }
  0x5e   : > { %p965_p9 = pneg %p964_p0 }
  0x60   : > { %p972_p8 = pnand %p971_p10, %p965_p9 }
  0x62   : > { %975 = shalt.err (!%p972_p8)
}
  0x63   : > { %830 = dma.hbm_to_vmem [thread:$0]  (!%p1217_p12), %s1388_s0, 32, %s1213_s16, [#allocation3]  }
  0x64   : > { %p1408_p7 = scmp.ne.s32.totalorder %s1405_s14, 0 }
  0x65   : > { %p1409_p3 = scmp.eq.s32.totalorder (!%p1408_p7), %s1173_s9, 0 }
  0x66   : > { %258 = sbr.rel (%p1408_p7) target bundleno = 613 (0x265), region = 40 }
  0x6d   : > { %1021 = dma.done.wait (%p1409_p3), [#allocation3], 32   ;;  %p1410_p13 = pmov %p1409_p3 }
  0x6e   : > { %s264_s24 = sand.u32 1, %s1173_s9   ;;  %s1277_s28 = sand.u32 1, %s1038_s19  }
  0x6f   : > { %1023 = vsyncadd (%p1410_p13), [#allocation3], 4294967264  ;;  %s816_s12 = smul.u32 104, %s1277_s28  ;;  %s265_s23 = scalar_lea.sflag [#allocation6], %s264_s24 }
  0x70   : > { %p1411_p12 = scmp.ne.s32.totalorder %s1402_s13, 0 }
  0x71   : > { %s1280_s15 = scalar_lea.vmem [#allocation5], %s816_s12 }
  0x72   : > { %1025 = dma.done.wait (%p1411_p12), %s265_s23, 3712  }
  0x73   : > { %1027 = vsyncadd (%p1411_p12), %s265_s23, 4294963584  ;;  %v1053_v0 = vmov 0.0|0.0   ;;  %vm1054_vm0 = vmmov 0   ;;  %v1055_v1 = vmov 0.0   ;;  %v322_v2 = vld [vmem:[%s1280_s15] sm:$0xff]  ;;  %v323_v3 = vld [vmem:[%s1280_s15 + $0x8] sm:$0xff] }
  0x74   : > { %772 = vmatprep.subr.bf16.mxu0 %v1053_v0  ;;  %734 = vmatprep.mubr.msk.f32.mxu0 %vm1054_vm0, %v1055_v1  ;;  %v324_v4 = vld [vmem:[%s1280_s15 + $0x10] sm:$0xff]  ;;  %v773_v5 = vpack.c.bf16 %v323_v3, %v322_v2  ;;  %v325_v6 = vld [vmem:[%s1280_s15 + $0x18] sm:$0xff]  ;;  %v326_v8 = vld [vmem:[%s1280_s15 + $0x20] sm:$0xff]  ;;  %vm346_vm1 = vcmask 1043456   ;;  %vm342_vm2 = vcmask 818176   ;;  %s665_s13 = sshll.u32 %s1277_s28, 7 }
  0x75   : > { %790 = vmatprep.subr.bf16.mxu1 %v1053_v0  ;;  %769 = vmatprep.mubr.msk.f32.mxu1 %vm1054_vm0, %v1055_v1  ;;  %v776_v7 = vpack.c.bf16 %v325_v6, %v324_v4  ;;  %v327_v9 = vld [vmem:[%s1280_s15 + $0x28] sm:$0xff]  ;;  %v328_v11 = vld [vmem:[%s1280_s15 + $0x30] sm:$0xff]  ;;  %v329_v12 = vld [vmem:[%s1280_s15 + $0x38] sm:$0xff]  ;;  %s1307_s14 = scalar_lea.vmem [#allocation7], %s665_s13  ;;  %p315_p6 = scmp.lt.s32.totalorder %s1173_s9, 6 }
  0x76   : > { %774 = vmatpush3.bf16.msra.mxu0 %v773_v5  ;;  %v779_v10 = vpack.c.bf16 %v327_v9, %v326_v8  ;;  %v782_v13 = vpack.c.bf16 %v329_v12, %v328_v11  ;;  %v330_v14 = vld [vmem:[%s1280_s15 + $0x40] sm:$0xff]  ;;  %v331_v15 = vld [vmem:[%s1280_s15 + $0x48] sm:$0xff]  ;;  %v332_v17 = vld [vmem:[%s1280_s15 + $0x50] sm:$0xff]  ;;  %s666_s17 = sshll.u32 %s1277_s28, 1  ;;  %s673_s1 = sshll.u32 %s1173_s9, 5 }
  0x77   : > { %775 = vmatprep.subr.bf16.mxu0 %v1053_v0  ;;  %v785_v16 = vpack.c.bf16 %v331_v15, %v330_v14  ;;  %v333_v18 = vld [vmem:[%s1280_s15 + $0x58] sm:$0xff]  ;;  %v334_v20 = vld [vmem:[%s1280_s15 + $0x60] sm:$0xf]  ;;  %v427_v22 = vld [vmem:[%s1307_s14] sm:$0xff]  ;;  %s316_s16 = scalar_select %p315_p6, %s1173_s9, 6 }
  0x78   : > { %v788_v19 = vpack.c.bf16 %v333_v18, %v332_v17  ;;  %v321_v21 = vld [vmem:[#allocation2] sm:$0x3]  ;;  %v429_v25 = vld [vmem:[%s1307_s14 + $0x10] sm:$0xff]  ;;  %v430_v26 = vld [vmem:[%s1307_s14 + $0x18] sm:$0xff]  ;;  %s314_s6 = scalar_lea.vmem [#allocation8], %s666_s17  ;;  %s1345_s15 = scalar_lea.hbm %s1393_s5, %s673_s1 }
  0x79   : > { %v428_v23 = vld [vmem:[%s1307_s14 + $0x8] sm:$0xff]  ;;  %v794_v27 = vpack.c.bf16 %v430_v26, %v429_v25  ;;  %v431_v28 = vld [vmem:[%s1307_s14 + $0x20] sm:$0xff]  ;;  %v433_v31 = vld [vmem:[%s1307_s14 + $0x30] sm:$0xff]  ;;  %s317_s10 = scalar_lea.vmem %s1390_s2, %s316_s16  ;;  %s320_s11 = scalar_lea.vmem %s1392_s4, %s316_s16 }
  0x7a   : > { %777 = vmatpush3.bf16.msra.mxu0 %v776_v7  ;;  %v791_v24 = vpack.c.bf16 %v428_v23, %v427_v22  ;;  %v432_v29 = vld [vmem:[%s1307_s14 + $0x28] sm:$0xff]  ;;  %v434_v32 = vld [vmem:[%s1307_s14 + $0x38] sm:$0xff]  ;;  %v435_v34 = vld [vmem:[%s1307_s14 + $0x40] sm:$0xff]  ;;  %s535_s24 = sshll.u32 %s314_s6, 4  ;;  %s522_s13 = scalar_lea.sflag [#allocation4], %s1277_s28  ;;  %s1347_s24 = int_to_ptr.vmem [resolvable:$true] %s535_s24 }
  0x7b   : > { %778 = vmatprep.subr.bf16.mxu0 %v1053_v0  ;;  %v797_v30 = vpack.c.bf16 %v432_v29, %v431_v28  ;;  %v800_v33 = vpack.c.bf16 %v434_v32, %v433_v31  ;;  %v436_v35 = vld [vmem:[%s1307_s14 + $0x48] sm:$0xff]  ;;  %v437_v37 = vld [vmem:[%s1307_s14 + $0x50] sm:$0xff]  ;;  %v438_v38 = vld [vmem:[%s1307_s14 + $0x58] sm:$0xff]  ;;  %p1412_p2 = scmp.ne.s32.totalorder %s1403_s27, 0  ;;  %s1056_s9 = smov [#allocation8]  }
  0x7c   : > { %792 = vmatpush3.bf16.msra.mxu1 %v791_v24  ;;  %v803_v36 = vpack.c.bf16 %v436_v35, %v435_v34  ;;  %v806_v39 = vpack.c.bf16 %v438_v38, %v437_v37  ;;  %v439_v40 = vld [vmem:[%s1307_s14 + $0x60] sm:$0xff]  ;;  %v440_v41 = vld [vmem:[%s1307_s14 + $0x68] sm:$0xff]  ;;  %v441_v43 = vld [vmem:[%s1307_s14 + $0x70] sm:$0xff]  ;;  %s980_s16 = sshll.u32 %s1056_s9, 4  ;;  %s981_s16 = int_to_ptr.vmem [resolvable:$false] %s980_s16 }
  0x7d   : > { %793 = vmatprep.subr.bf16.mxu1 %v1053_v0  ;;  %v809_v42 = vpack.c.bf16 %v440_v41, %v439_v40  ;;  %v442_v44 = vld [vmem:[%s1307_s14 + $0x78] sm:$0xff]  ;;  %s976_s14 = scalar_lea.vmem %s1347_s24, 32  ;;  %s982_s7 = scalar_lea.vmem %s981_s16, 64 }
  0x7e   : > { %780 = vmatpush3.bf16.msra.mxu0 %v779_v10  ;;  %v812_v45 = vpack.c.bf16 %v442_v44, %v441_v43  ;;  %v667_v46 = vld [vmem:[%s317_s10] ss:$0 sm:$0xff]  ;;  %p977_p11 = scmp.ne.s32.totalorder %s1347_s24, %s976_s14  ;;  %p983_p9 = scmp.lt.s32.totalorder %s1347_s24, %s981_s16 }
  0x7f   : > { %781 = vmatprep.subr.bf16.mxu0 %v1053_v0  ;;  %v671_v55 = vld [vmem:[%s320_s11] ss:$0 sm:$0xff]  ;;  %p984_p1 = scmp.lt.s32.totalorder %s982_s7, %s976_s14 }
  0x80   : > { %795 = vmatpush3.bf16.msra.mxu1 %v794_v27  ;;  %p978_p5 = pnand %p977_p11, %p1412_p2 }
  0x81   : > { %796 = vmatprep.subr.bf16.mxu1 %v1053_v0  ;;  %p985_p4 = por %p984_p1, %p983_p9 }
  0x82   : > { %783 = vmatpush3.bf16.msra.mxu0 %v782_v13  ;;  %p979_p0 = pneg %p978_p5 }
  0x83   : > { %784 = vmatprep.subr.bf16.mxu0 %v1053_v0 }
  0x84   : > { %798 = vmatpush3.bf16.msra.mxu1 %v797_v30  ;;  %p986_p10 = pnand %p985_p4, %p979_p0 }
  0x85   : > { %799 = vmatprep.subr.bf16.mxu1 %v1053_v0 }
  0x86   : > { %786 = vmatpush3.bf16.msra.mxu0 %v785_v16 }
  0x87   : > { %787 = vmatprep.subr.bf16.mxu0 %v1053_v0 }
  0x88   : > { %801 = vmatpush3.bf16.msra.mxu1 %v800_v33 }
  0x89   : > { %802 = vmatprep.subr.bf16.mxu1 %v1053_v0 }
  0x8a   : > { %789 = vmatpush3.bf16.msra.mxu0 %v788_v19 }
  0x8b   : > { %732 = vmatprep.subr.mxu0 %v1055_v1 }
  0x8c   : > { %804 = vmatpush3.bf16.msra.mxu1 %v803_v36 }
  0x8d   : > { %805 = vmatprep.subr.bf16.mxu1 %v1053_v0 }
  0x8e   : > { %733 = vmatpush3.msk.msra.mxu0 %vm346_vm1, %v334_v20 }
  0x8f   : > { %735 = vmatmul.mubr.msk.f32.vlgmr.msra.gmra.mrb[0].mxu0 %vm342_vm2, %v321_v21 }
  0x90   : > { %807 = vmatpush3.bf16.msra.mxu1 %v806_v39 }
  0x91   : > { %808 = vmatprep.subr.bf16.mxu1 %v1053_v0 }
  0x94   : > { %810 = vmatpush3.bf16.msra.mxu1 %v809_v42 }
  0x95   : > { %811 = vmatprep.subr.bf16.mxu1 %v1053_v0 }
  0x98   : > { %813 = vmatpush3.bf16.msra.mxu1 %v812_v45 }
 0x162   : > { %v416_v47 = vpop.f32.mrb[0].mxu0 }
 0x163   : > { %v417_v48 = vadd.f32 %v667_v46, %v416_v47  ;;  %v736_v49 = vpop.f32.mrb[1].mxu0 }
 0x165   : > { %v670_v50 = vmul.f32 -1.442695, %v417_v48 }
 0x167   : > { %884 = vpow2.f32 %v670_v50 }
 0x171   : > { %v885_v51 = vpop.eup %884 }
 0x172   : > { %v423_v52 = vadd.f32 1.0, %v885_v51 }
 0x174   : > { %886 = vrcp.f32 %v423_v52 }
 0x17e   : > { %v887_v53 = vpop.eup %886 }
 0x17f   : > { %v426_v54 = vmul.f32 %v887_v53, %v417_v48 }
 0x181   : > { %770 = vmatmul.mubr.f32.vlgmr.msra.gmra.mrb[0].mxu1 %v426_v54 }
 0x254   : > { %v516_v56 = vpop.f32.mrb[0].mxu1 }
 0x255   : > { %v517_v57 = vadd.f32 %v671_v55, %v516_v56  ;;  %v771_v58 = vpop.f32.mrb[1].mxu1 }
 0x257   : > { %520 = vst [vmem:[%s314_s6] sm:$0x3] %v517_v57 }
 0x258   : > { %989 = shalt.err (!%p986_p10)
}
 0x259   : > { %s990_s28 = scalar_lea.hbm %s1345_s15, 32  ;;  %s994_s17 = scalar_lea.hbm %s1393_s5, 224 }
 0x25a   : > { %p991_p8 = scmp.ne.s32.totalorder %s1345_s15, %s990_s28  ;;  %p995_p13 = scmp.lt.u32.totalorder %s1345_s15, %s1393_s5 }
 0x25b   : > { %p996_p12 = scmp.lt.u32.totalorder %s994_s17, %s990_s28  ;;  %p998_p11 = scmp.lt.u32.totalorder %s990_s28, %s1345_s15 }
 0x25c   : > { %p992_p7 = pnand %p991_p8, %p1412_p2 }
 0x25d   : > { %p997_p6 = por %p996_p12, %p995_p13 }
 0x25e   : > { %p993_p3 = pneg %p992_p7 }
 0x25f   : > { %p999_p5 = por %p998_p11, %p997_p6 }
 0x261   : > { %p1000_p0 = pnand %p999_p5, %p993_p3 }
 0x263   : > { %1003 = shalt.err (!%p1000_p0)
}
 0x264   : > { %825 = dma.vmem_to_hbm [thread:$0]  (%p1412_p2), %s1347_s24, 32, %s1345_s15, %s522_s13  }
 0x265 PF: > { %p845_p9 = scmp.ge.s32.totalorder %s1046_s21, 2  ;;  %s547_s11 = sand.u32 1, %s1034_s18  }
 0x266   : > { %p1413_p1 = scmp.ne.s32.totalorder %s1404_s8, 0  ;;  %s548_s1 = scalar_lea.sflag [#allocation4], %s547_s11 }
 0x268   : > { %p839_p4 = pnand %p845_p9, %p1413_p1 }
 0x26a   : > { %1029 = dma.done.wait (!%p839_p4), %s548_s1, 32  }
 0x26b   : > { %1031 = vsyncadd (!%p839_p4), %s548_s1, 4294967264  ;;  %p19_p10 = scmp.ge.s32.totalorder %s1108_s22, 9   ;;  %s1414_s18 = smov %s1038_s19 }
 0x26c   : > { %s1415_s19 = smov %s1042_s20  ;;  %s1416_s20 = smov %s1118_s25 }
 0x26d   : > { %s1417_s21 = smov %s1108_s22  ;;  %21 = sbr.rel (!%p19_p10) target bundleno = 8 (0x8), region = 107 }
 0x274   :  { %553 = vsyncpa [#allocation3], 1 }
 0x275   :  { %555 = vsyncpa [#allocation3 + $0x1], 1 }
 0x276   :  { %556 = vsyncpa [#allocation6], 1 }
 0x277   :  { %558 = vsyncpa [#allocation6 + $0x1], 1 }
 0x278   :  { %559 = vsyncpa [#allocation4], 1 }
 0x279   :  { %561 = vsyncpa [#allocation4 + $0x1], 1 }

</bundles_post_ra>
